<compile_context>
chip_gen: v6e
topology: v6e:2x2x1
jax: 0.10.0
libtpu: 0.0.40
codegen_flags: <defaults>
</compile_context>

<pallas_src>
import jax
import jax.numpy as jnp
from jax import lax
from jax.experimental import pallas as pl
from jax.experimental.pallas import tpu as pltpu

_NBUF = 16   # in-flight row-gather DMAs (power of two, multiple of _UNROLL)
_UNROLL = 8  # rows processed per hot-loop iteration


def _embed_gather_add_kernel(ids_ref,   # (Np,)        int32, SMEM (scalar prefetch)
                             tt_ref,    # (tile_rows,1) int32, VMEM
                             ttab_ref,  # (TV, H)      f32,   VMEM (tiny, resident)
                             wtab_hbm,  # (V, H)       f32,   HBM  (pl.ANY)
                             out_ref,   # (tile_rows,H) f32,  VMEM output block
                             sem):      # DMA semaphores, shape (_NBUF,)
    tile_rows, H = out_ref.shape
    V = wtab_hbm.shape[0]
    TV = ttab_ref.shape[0]
    base = pl.program_id(0) * tile_rows

    def read_idx(r):
        # Clamp: PyTorch nn.Embedding would raise on OOB ids; we clamp so the
        # DMA source stays in range (never triggered for valid inputs).
        return jnp.clip(ids_ref[base + r], 0, V - 1)

    def start_dma(r, idx):
        pltpu.make_async_copy(
            wtab_hbm.at[pl.ds(idx, 1), :],
            out_ref.at[pl.ds(r, 1), :],
            sem.at[r & (_NBUF - 1)],
        ).start()

    def wait_dma(r):
        pltpu.make_async_copy(
            wtab_hbm.at[pl.ds(0, 1), :],      # shape/dtype only (byte count)
            out_ref.at[pl.ds(r, 1), :],
            sem.at[r & (_NBUF - 1)],
        ).wait()

    # ---- Prime the pipeline (static unroll, <= _NBUF starts). ----
    nbuf_eff = min(_NBUF, tile_rows)
    for r in range(nbuf_eff):
        start_dma(r, read_idx(r))

    # ---- Hot loop: no refill branch, 8 rows / iteration, idx read before wait. ----
    n_hot = tile_rows - nbuf_eff          # static; multiple of _UNROLL by construction
    if n_hot > 0:
        def hot_body(c, carry):
            r0 = c * _UNROLL
            for u in range(_UNROLL):      # static 8-wide unroll
                r = r0 + u
                nxt = r + nbuf_eff
                idx_next = read_idx(nxt)  # SMEM read BEFORE the wait
                wait_dma(r)
                start_dma(nxt, idx_next)
            return carry
        lax.fori_loop(0, n_hot // _UNROLL, hot_body, 0)

    # ---- Wait-only epilogue for the last nbuf_eff rows (static unroll). ----
    for r in range(nbuf_eff):
        wait_dma(n_hot + r)

    # ---- Token-type embedding fused into the output RMW (no temporary init). ----
    tt = tt_ref[...]                                  # (tile_rows, 1) int32
    T = ttab_ref[TV - 1, :][None, :]                  # (1, H), hoisted broadcast
    for t in range(TV - 2, -1, -1):                   # TV == 2 -> single select
        T = jnp.where(tt == t, ttab_ref[t, :][None, :], T)
    out_ref[...] = out_ref[...] + T


def bert_word_embeddings(input_ids, token_type_ids, word_table, type_table,
                         tile_rows=1024):
    """input_ids, token_type_ids: (B,S) int; word_table: (V,H); type_table: (TV,H)."""
    B, S = input_ids.shape
    V, H = word_table.shape
    TV = type_table.shape[0]
    N = B * S

    # ---- Choose the row tile. ----
    # * multiple of 8 sublanes
    # * keep the grid >= 2 steps when possible (v7x: 2 TensorCores)
    # * cap so the double-buffered output block stays <= ~24 MiB (v7x VMEM)
    half = ((pl.cdiv(N, 2) + 7) // 8) * 8
    vmem_cap_rows = max(8, ((24 * 1024 * 1024) // (2 * H * 4) // 8) * 8)
    tile_rows = max(8, min(int(tile_rows), half, vmem_cap_rows))
    tile_rows = ((tile_rows + 7) // 8) * 8
    Np = pl.cdiv(N, tile_rows) * tile_rows

    ids = input_ids.reshape(-1).astype(jnp.int32)
    tts = token_type_ids.reshape(-1).astype(jnp.int32)
    if Np > N:
        pad = Np - N
        ids = jnp.concatenate([ids, jnp.zeros((pad,), jnp.int32)])
        tts = jnp.concatenate([tts, jnp.zeros((pad,), jnp.int32)])
    tts2d = tts.reshape(Np, 1)

    wtab = word_table.astype(jnp.float32)
    ttab = type_table.astype(jnp.float32)

    # Scoped-VMEM budget: double-buffered out block + tt block + type table + margin.
    vmem_need = 2 * (tile_rows * H * 4 + tile_rows * 4) + 2 * TV * H * 4 + (1 << 20)
    vmem_limit = int(min(96 * 1024 * 1024, max(32 * 1024 * 1024, 2 * vmem_need)))

    out_flat = pl.pallas_call(
        _embed_gather_add_kernel,
        out_shape=jax.ShapeDtypeStruct((Np, H), jnp.float32),
        grid_spec=pltpu.PrefetchScalarGridSpec(
            num_scalar_prefetch=1,                       # input_ids -> SMEM
            grid=(Np // tile_rows,),
            in_specs=[
                pl.BlockSpec((tile_rows, 1), lambda i, ids: (i, 0)),  # token types
                pl.BlockSpec((TV, H), lambda i, ids: (0, 0)),         # type table (VMEM)
                pl.BlockSpec(memory_space=pl.ANY),                    # word table (HBM)
            ],
            out_specs=pl.BlockSpec((tile_rows, H), lambda i, ids: (i, 0)),
            scratch_shapes=[pltpu.SemaphoreType.DMA((_NBUF,))],
        ),
        compiler_params=pltpu.CompilerParams(
            dimension_semantics=("parallel",),
            vmem_limit_bytes=vmem_limit),
    )(ids, tts2d, ttab, wtab)

    return out_flat[:N].reshape(B, S, H)


if __name__ == "__main__":
    # Small synthetic config (stands in for a BERT checkpoint's embedding tables).
    B, S, H = 2, 8, 32
    VOCAB, TYPE_VOCAB = 64, 2

    key = jax.random.PRNGKey(0)
    k1, k2, k3, k4 = jax.random.split(key, 4)

    word_table = jax.random.normal(k1, (VOCAB, H), dtype=jnp.float32) * 0.02
    type_table = jax.random.normal(k2, (TYPE_VOCAB, H), dtype=jnp.float32) * 0.02
    input_ids = jax.random.randint(k3, (B, S), 0, VOCAB, dtype=jnp.int32)
    token_type_ids = jax.random.randint(k4, (B, S), 0, TYPE_VOCAB, dtype=jnp.int32)

    out = bert_word_embeddings(input_ids, token_type_ids, word_table, type_table)
    out = jax.block_until_ready(out)

    # Pure-JAX reference for correctness.
    ref = jnp.take(word_table, input_ids, axis=0) + jnp.take(
        type_table, token_type_ids, axis=0)
    assert out.shape == (B, S, H) and out.dtype == jnp.float32
    assert jnp.allclose(out, ref, atol=1e-6), "mismatch vs reference"

    print("KERNEL_OK")

    # TODO(synk): merge_subword_representation / freeze / unfreeze are host-side
    # utilities outside the forward pass and are not implemented as kernels.
</pallas_src>

<mosaic_0001>
module attributes {stable_mosaic.version = 11 : i64} {
  func.func @_embed_gather_add_kernel(%arg0: i32, %arg1: memref<16xi32, #tpu.memory_space<smem>>, %arg2: memref<8x1xi32, #tpu.memory_space<vmem>>, %arg3: memref<2x32xf32, #tpu.memory_space<vmem>>, %arg4: memref<64x32xf32, #tpu.memory_space<any>>, %arg5: memref<8x32xf32, #tpu.memory_space<vmem>>, %arg6: memref<16x!tpu.dma_semaphore, #tpu.memory_space<semaphore_mem>>) attributes {dimension_semantics = [#tpu.dimension_semantics<parallel>], iteration_bounds = array<i64: 2>, scalar_prefetch = 1 : i64, scratch_operands = 1 : i64, tpu.core_type = #tpu.core_type<tc>, window_params = [{transform_indices = @transform_0, window_bounds = array<i64: 8, 1>}, {pipeline_mode = #tpu.pipeline_mode<synchronous>, transform_indices = @transform_1, window_bounds = array<i64: 2, 32>}, {}, {transform_indices = @transform_3, window_bounds = array<i64: 8, 32>}]} {
    %c8_i32 = arith.constant 8 : i32
    %0 = arith.muli %arg0, %c8_i32 : i32
    %c0_i32 = arith.constant 0 : i32
    %1 = arith.addi %0, %c0_i32 : i32
    %2 = arith.index_cast %1 : i32 to index
    %3 = memref.load %arg1[%2] : memref<16xi32, #tpu.memory_space<smem>>
    %c0_i32_0 = arith.constant 0 : i32
    %c63_i32 = arith.constant 63 : i32
    %4 = arith.maxsi %c0_i32_0, %3 : i32
    %5 = arith.minsi %c63_i32, %4 : i32
    %c0_i32_1 = arith.constant 0 : i32
    %c0_i32_2 = arith.constant 0 : i32
    %6 = tpu.memref_slice %arg4[%5, %c0_i32_2] : memref<64x32xf32, #tpu.memory_space<any>> -> memref<1x32xf32, #tpu.memory_space<any>>
    %c0_i32_3 = arith.constant 0 : i32
    %c0_i32_4 = arith.constant 0 : i32
    %7 = tpu.memref_slice %arg5[%c0_i32_3, %c0_i32_4] : memref<8x32xf32, #tpu.memory_space<vmem>> -> memref<1x32xf32, #tpu.memory_space<vmem>>
    %8 = tpu.memref_slice %arg6[%c0_i32_1] : memref<16x!tpu.dma_semaphore, #tpu.memory_space<semaphore_mem>> -> memref<1x!tpu.dma_semaphore, #tpu.memory_space<semaphore_mem>>
    %9 = tpu.memref_squeeze %8 : memref<1x!tpu.dma_semaphore, #tpu.memory_space<semaphore_mem>> -> memref<!tpu.dma_semaphore, #tpu.memory_space<semaphore_mem>>
    tpu.enqueue_dma source(%6 : memref<1x32xf32, #tpu.memory_space<any>>) target(%7 : memref<1x32xf32, #tpu.memory_space<vmem>>) target_semaphore(%9 : memref<!tpu.dma_semaphore, #tpu.memory_space<semaphore_mem>>)
    %c1_i32 = arith.constant 1 : i32
    %10 = arith.addi %0, %c1_i32 : i32
    %11 = arith.index_cast %10 : i32 to index
    %12 = memref.load %arg1[%11] : memref<16xi32, #tpu.memory_space<smem>>
    %c0_i32_5 = arith.constant 0 : i32
    %c63_i32_6 = arith.constant 63 : i32
    %13 = arith.maxsi %c0_i32_5, %12 : i32
    %14 = arith.minsi %c63_i32_6, %13 : i32
    %c1_i32_7 = arith.constant 1 : i32
    %c0_i32_8 = arith.constant 0 : i32
    %15 = tpu.memref_slice %arg4[%14, %c0_i32_8] : memref<64x32xf32, #tpu.memory_space<any>> -> memref<1x32xf32, #tpu.memory_space<any>>
    %c1_i32_9 = arith.constant 1 : i32
    %c0_i32_10 = arith.constant 0 : i32
    %16 = tpu.memref_slice %arg5[%c1_i32_9, %c0_i32_10] : memref<8x32xf32, #tpu.memory_space<vmem>> -> memref<1x32xf32, #tpu.memory_space<vmem>>
    %17 = tpu.memref_slice %arg6[%c1_i32_7] : memref<16x!tpu.dma_semaphore, #tpu.memory_space<semaphore_mem>> -> memref<1x!tpu.dma_semaphore, #tpu.memory_space<semaphore_mem>>
    %18 = tpu.memref_squeeze %17 : memref<1x!tpu.dma_semaphore, #tpu.memory_space<semaphore_mem>> -> memref<!tpu.dma_semaphore, #tpu.memory_space<semaphore_mem>>
    tpu.enqueue_dma source(%15 : memref<1x32xf32, #tpu.memory_space<any>>) target(%16 : memref<1x32xf32, #tpu.memory_space<vmem>>) target_semaphore(%18 : memref<!tpu.dma_semaphore, #tpu.memory_space<semaphore_mem>>)
    %c2_i32 = arith.constant 2 : i32
    %19 = arith.addi %0, %c2_i32 : i32
    %20 = arith.index_cast %19 : i32 to index
    %21 = memref.load %arg1[%20] : memref<16xi32, #tpu.memory_space<smem>>
    %c0_i32_11 = arith.constant 0 : i32
    %c63_i32_12 = arith.constant 63 : i32
    %22 = arith.maxsi %c0_i32_11, %21 : i32
    %23 = arith.minsi %c63_i32_12, %22 : i32
    %c2_i32_13 = arith.constant 2 : i32
    %c0_i32_14 = arith.constant 0 : i32
    %24 = tpu.memref_slice %arg4[%23, %c0_i32_14] : memref<64x32xf32, #tpu.memory_space<any>> -> memref<1x32xf32, #tpu.memory_space<any>>
    %c2_i32_15 = arith.constant 2 : i32
    %c0_i32_16 = arith.constant 0 : i32
    %25 = tpu.memref_slice %arg5[%c2_i32_15, %c0_i32_16] : memref<8x32xf32, #tpu.memory_space<vmem>> -> memref<1x32xf32, #tpu.memory_space<vmem>>
    %26 = tpu.memref_slice %arg6[%c2_i32_13] : memref<16x!tpu.dma_semaphore, #tpu.memory_space<semaphore_mem>> -> memref<1x!tpu.dma_semaphore, #tpu.memory_space<semaphore_mem>>
    %27 = tpu.memref_squeeze %26 : memref<1x!tpu.dma_semaphore, #tpu.memory_space<semaphore_mem>> -> memref<!tpu.dma_semaphore, #tpu.memory_space<semaphore_mem>>
    tpu.enqueue_dma source(%24 : memref<1x32xf32, #tpu.memory_space<any>>) target(%25 : memref<1x32xf32, #tpu.memory_space<vmem>>) target_semaphore(%27 : memref<!tpu.dma_semaphore, #tpu.memory_space<semaphore_mem>>)
    %c3_i32 = arith.constant 3 : i32
    %28 = arith.addi %0, %c3_i32 : i32
    %29 = arith.index_cast %28 : i32 to index
    %30 = memref.load %arg1[%29] : memref<16xi32, #tpu.memory_space<smem>>
    %c0_i32_17 = arith.constant 0 : i32
    %c63_i32_18 = arith.constant 63 : i32
    %31 = arith.maxsi %c0_i32_17, %30 : i32
    %32 = arith.minsi %c63_i32_18, %31 : i32
    %c3_i32_19 = arith.constant 3 : i32
    %c0_i32_20 = arith.constant 0 : i32
    %33 = tpu.memref_slice %arg4[%32, %c0_i32_20] : memref<64x32xf32, #tpu.memory_space<any>> -> memref<1x32xf32, #tpu.memory_space<any>>
    %c3_i32_21 = arith.constant 3 : i32
    %c0_i32_22 = arith.constant 0 : i32
    %34 = tpu.memref_slice %arg5[%c3_i32_21, %c0_i32_22] : memref<8x32xf32, #tpu.memory_space<vmem>> -> memref<1x32xf32, #tpu.memory_space<vmem>>
    %35 = tpu.memref_slice %arg6[%c3_i32_19] : memref<16x!tpu.dma_semaphore, #tpu.memory_space<semaphore_mem>> -> memref<1x!tpu.dma_semaphore, #tpu.memory_space<semaphore_mem>>
    %36 = tpu.memref_squeeze %35 : memref<1x!tpu.dma_semaphore, #tpu.memory_space<semaphore_mem>> -> memref<!tpu.dma_semaphore, #tpu.memory_space<semaphore_mem>>
    tpu.enqueue_dma source(%33 : memref<1x32xf32, #tpu.memory_space<any>>) target(%34 : memref<1x32xf32, #tpu.memory_space<vmem>>) target_semaphore(%36 : memref<!tpu.dma_semaphore, #tpu.memory_space<semaphore_mem>>)
    %c4_i32 = arith.constant 4 : i32
    %37 = arith.addi %0, %c4_i32 : i32
    %38 = arith.index_cast %37 : i32 to index
    %39 = memref.load %arg1[%38] : memref<16xi32, #tpu.memory_space<smem>>
    %c0_i32_23 = arith.constant 0 : i32
    %c63_i32_24 = arith.constant 63 : i32
    %40 = arith.maxsi %c0_i32_23, %39 : i32
    %41 = arith.minsi %c63_i32_24, %40 : i32
    %c4_i32_25 = arith.constant 4 : i32
    %c0_i32_26 = arith.constant 0 : i32
    %42 = tpu.memref_slice %arg4[%41, %c0_i32_26] : memref<64x32xf32, #tpu.memory_space<any>> -> memref<1x32xf32, #tpu.memory_space<any>>
    %c4_i32_27 = arith.constant 4 : i32
    %c0_i32_28 = arith.constant 0 : i32
    %43 = tpu.memref_slice %arg5[%c4_i32_27, %c0_i32_28] : memref<8x32xf32, #tpu.memory_space<vmem>> -> memref<1x32xf32, #tpu.memory_space<vmem>>
    %44 = tpu.memref_slice %arg6[%c4_i32_25] : memref<16x!tpu.dma_semaphore, #tpu.memory_space<semaphore_mem>> -> memref<1x!tpu.dma_semaphore, #tpu.memory_space<semaphore_mem>>
    %45 = tpu.memref_squeeze %44 : memref<1x!tpu.dma_semaphore, #tpu.memory_space<semaphore_mem>> -> memref<!tpu.dma_semaphore, #tpu.memory_space<semaphore_mem>>
    tpu.enqueue_dma source(%42 : memref<1x32xf32, #tpu.memory_space<any>>) target(%43 : memref<1x32xf32, #tpu.memory_space<vmem>>) target_semaphore(%45 : memref<!tpu.dma_semaphore, #tpu.memory_space<semaphore_mem>>)
    %c5_i32 = arith.constant 5 : i32
    %46 = arith.addi %0, %c5_i32 : i32
    %47 = arith.index_cast %46 : i32 to index
    %48 = memref.load %arg1[%47] : memref<16xi32, #tpu.memory_space<smem>>
    %c0_i32_29 = arith.constant 0 : i32
    %c63_i32_30 = arith.constant 63 : i32
    %49 = arith.maxsi %c0_i32_29, %48 : i32
    %50 = arith.minsi %c63_i32_30, %49 : i32
    %c5_i32_31 = arith.constant 5 : i32
    %c0_i32_32 = arith.constant 0 : i32
    %51 = tpu.memref_slice %arg4[%50, %c0_i32_32] : memref<64x32xf32, #tpu.memory_space<any>> -> memref<1x32xf32, #tpu.memory_space<any>>
    %c5_i32_33 = arith.constant 5 : i32
    %c0_i32_34 = arith.constant 0 : i32
    %52 = tpu.memref_slice %arg5[%c5_i32_33, %c0_i32_34] : memref<8x32xf32, #tpu.memory_space<vmem>> -> memref<1x32xf32, #tpu.memory_space<vmem>>
    %53 = tpu.memref_slice %arg6[%c5_i32_31] : memref<16x!tpu.dma_semaphore, #tpu.memory_space<semaphore_mem>> -> memref<1x!tpu.dma_semaphore, #tpu.memory_space<semaphore_mem>>
    %54 = tpu.memref_squeeze %53 : memref<1x!tpu.dma_semaphore, #tpu.memory_space<semaphore_mem>> -> memref<!tpu.dma_semaphore, #tpu.memory_space<semaphore_mem>>
    tpu.enqueue_dma source(%51 : memref<1x32xf32, #tpu.memory_space<any>>) target(%52 : memref<1x32xf32, #tpu.memory_space<vmem>>) target_semaphore(%54 : memref<!tpu.dma_semaphore, #tpu.memory_space<semaphore_mem>>)
    %c6_i32 = arith.constant 6 : i32
    %55 = arith.addi %0, %c6_i32 : i32
    %56 = arith.index_cast %55 : i32 to index
    %57 = memref.load %arg1[%56] : memref<16xi32, #tpu.memory_space<smem>>
    %c0_i32_35 = arith.constant 0 : i32
    %c63_i32_36 = arith.constant 63 : i32
    %58 = arith.maxsi %c0_i32_35, %57 : i32
    %59 = arith.minsi %c63_i32_36, %58 : i32
    %c6_i32_37 = arith.constant 6 : i32
    %c0_i32_38 = arith.constant 0 : i32
    %60 = tpu.memref_slice %arg4[%59, %c0_i32_38] : memref<64x32xf32, #tpu.memory_space<any>> -> memref<1x32xf32, #tpu.memory_space<any>>
    %c6_i32_39 = arith.constant 6 : i32
    %c0_i32_40 = arith.constant 0 : i32
    %61 = tpu.memref_slice %arg5[%c6_i32_39, %c0_i32_40] : memref<8x32xf32, #tpu.memory_space<vmem>> -> memref<1x32xf32, #tpu.memory_space<vmem>>
    %62 = tpu.memref_slice %arg6[%c6_i32_37] : memref<16x!tpu.dma_semaphore, #tpu.memory_space<semaphore_mem>> -> memref<1x!tpu.dma_semaphore, #tpu.memory_space<semaphore_mem>>
    %63 = tpu.memref_squeeze %62 : memref<1x!tpu.dma_semaphore, #tpu.memory_space<semaphore_mem>> -> memref<!tpu.dma_semaphore, #tpu.memory_space<semaphore_mem>>
    tpu.enqueue_dma source(%60 : memref<1x32xf32, #tpu.memory_space<any>>) target(%61 : memref<1x32xf32, #tpu.memory_space<vmem>>) target_semaphore(%63 : memref<!tpu.dma_semaphore, #tpu.memory_space<semaphore_mem>>)
    %c7_i32 = arith.constant 7 : i32
    %64 = arith.addi %0, %c7_i32 : i32
    %65 = arith.index_cast %64 : i32 to index
    %66 = memref.load %arg1[%65] : memref<16xi32, #tpu.memory_space<smem>>
    %c0_i32_41 = arith.constant 0 : i32
    %c63_i32_42 = arith.constant 63 : i32
    %67 = arith.maxsi %c0_i32_41, %66 : i32
    %68 = arith.minsi %c63_i32_42, %67 : i32
    %c7_i32_43 = arith.constant 7 : i32
    %c0_i32_44 = arith.constant 0 : i32
    %69 = tpu.memref_slice %arg4[%68, %c0_i32_44] : memref<64x32xf32, #tpu.memory_space<any>> -> memref<1x32xf32, #tpu.memory_space<any>>
    %c7_i32_45 = arith.constant 7 : i32
    %c0_i32_46 = arith.constant 0 : i32
    %70 = tpu.memref_slice %arg5[%c7_i32_45, %c0_i32_46] : memref<8x32xf32, #tpu.memory_space<vmem>> -> memref<1x32xf32, #tpu.memory_space<vmem>>
    %71 = tpu.memref_slice %arg6[%c7_i32_43] : memref<16x!tpu.dma_semaphore, #tpu.memory_space<semaphore_mem>> -> memref<1x!tpu.dma_semaphore, #tpu.memory_space<semaphore_mem>>
    %72 = tpu.memref_squeeze %71 : memref<1x!tpu.dma_semaphore, #tpu.memory_space<semaphore_mem>> -> memref<!tpu.dma_semaphore, #tpu.memory_space<semaphore_mem>>
    tpu.enqueue_dma source(%69 : memref<1x32xf32, #tpu.memory_space<any>>) target(%70 : memref<1x32xf32, #tpu.memory_space<vmem>>) target_semaphore(%72 : memref<!tpu.dma_semaphore, #tpu.memory_space<semaphore_mem>>)
    %c0_i32_47 = arith.constant 0 : i32
    %c0_i32_48 = arith.constant 0 : i32
    %c0_i32_49 = arith.constant 0 : i32
    %73 = tpu.memref_slice %arg4[%c0_i32_48, %c0_i32_49] : memref<64x32xf32, #tpu.memory_space<any>> -> memref<1x32xf32, #tpu.memory_space<any>>
    %c0_i32_50 = arith.constant 0 : i32
    %c0_i32_51 = arith.constant 0 : i32
    %74 = tpu.memref_slice %arg5[%c0_i32_50, %c0_i32_51] : memref<8x32xf32, #tpu.memory_space<vmem>> -> memref<1x32xf32, #tpu.memory_space<vmem>>
    %75 = tpu.memref_slice %arg6[%c0_i32_47] : memref<16x!tpu.dma_semaphore, #tpu.memory_space<semaphore_mem>> -> memref<1x!tpu.dma_semaphore, #tpu.memory_space<semaphore_mem>>
    %76 = tpu.memref_squeeze %75 : memref<1x!tpu.dma_semaphore, #tpu.memory_space<semaphore_mem>> -> memref<!tpu.dma_semaphore, #tpu.memory_space<semaphore_mem>>
    tpu.wait_dma2 semaphore(%76 : memref<!tpu.dma_semaphore, #tpu.memory_space<semaphore_mem>>) src(%73 : memref<1x32xf32, #tpu.memory_space<any>>) dst(%74 : memref<1x32xf32, #tpu.memory_space<vmem>>)
    %c1_i32_52 = arith.constant 1 : i32
    %c0_i32_53 = arith.constant 0 : i32
    %c0_i32_54 = arith.constant 0 : i32
    %77 = tpu.memref_slice %arg4[%c0_i32_53, %c0_i32_54] : memref<64x32xf32, #tpu.memory_space<any>> -> memref<1x32xf32, #tpu.memory_space<any>>
    %c1_i32_55 = arith.constant 1 : i32
    %c0_i32_56 = arith.constant 0 : i32
    %78 = tpu.memref_slice %arg5[%c1_i32_55, %c0_i32_56] : memref<8x32xf32, #tpu.memory_space<vmem>> -> memref<1x32xf32, #tpu.memory_space<vmem>>
    %79 = tpu.memref_slice %arg6[%c1_i32_52] : memref<16x!tpu.dma_semaphore, #tpu.memory_space<semaphore_mem>> -> memref<1x!tpu.dma_semaphore, #tpu.memory_space<semaphore_mem>>
    %80 = tpu.memref_squeeze %79 : memref<1x!tpu.dma_semaphore, #tpu.memory_space<semaphore_mem>> -> memref<!tpu.dma_semaphore, #tpu.memory_space<semaphore_mem>>
    tpu.wait_dma2 semaphore(%80 : memref<!tpu.dma_semaphore, #tpu.memory_space<semaphore_mem>>) src(%77 : memref<1x32xf32, #tpu.memory_space<any>>) dst(%78 : memref<1x32xf32, #tpu.memory_space<vmem>>)
    %c2_i32_57 = arith.constant 2 : i32
    %c0_i32_58 = arith.constant 0 : i32
    %c0_i32_59 = arith.constant 0 : i32
    %81 = tpu.memref_slice %arg4[%c0_i32_58, %c0_i32_59] : memref<64x32xf32, #tpu.memory_space<any>> -> memref<1x32xf32, #tpu.memory_space<any>>
    %c2_i32_60 = arith.constant 2 : i32
    %c0_i32_61 = arith.constant 0 : i32
    %82 = tpu.memref_slice %arg5[%c2_i32_60, %c0_i32_61] : memref<8x32xf32, #tpu.memory_space<vmem>> -> memref<1x32xf32, #tpu.memory_space<vmem>>
    %83 = tpu.memref_slice %arg6[%c2_i32_57] : memref<16x!tpu.dma_semaphore, #tpu.memory_space<semaphore_mem>> -> memref<1x!tpu.dma_semaphore, #tpu.memory_space<semaphore_mem>>
    %84 = tpu.memref_squeeze %83 : memref<1x!tpu.dma_semaphore, #tpu.memory_space<semaphore_mem>> -> memref<!tpu.dma_semaphore, #tpu.memory_space<semaphore_mem>>
    tpu.wait_dma2 semaphore(%84 : memref<!tpu.dma_semaphore, #tpu.memory_space<semaphore_mem>>) src(%81 : memref<1x32xf32, #tpu.memory_space<any>>) dst(%82 : memref<1x32xf32, #tpu.memory_space<vmem>>)
    %c3_i32_62 = arith.constant 3 : i32
    %c0_i32_63 = arith.constant 0 : i32
    %c0_i32_64 = arith.constant 0 : i32
    %85 = tpu.memref_slice %arg4[%c0_i32_63, %c0_i32_64] : memref<64x32xf32, #tpu.memory_space<any>> -> memref<1x32xf32, #tpu.memory_space<any>>
    %c3_i32_65 = arith.constant 3 : i32
    %c0_i32_66 = arith.constant 0 : i32
    %86 = tpu.memref_slice %arg5[%c3_i32_65, %c0_i32_66] : memref<8x32xf32, #tpu.memory_space<vmem>> -> memref<1x32xf32, #tpu.memory_space<vmem>>
    %87 = tpu.memref_slice %arg6[%c3_i32_62] : memref<16x!tpu.dma_semaphore, #tpu.memory_space<semaphore_mem>> -> memref<1x!tpu.dma_semaphore, #tpu.memory_space<semaphore_mem>>
    %88 = tpu.memref_squeeze %87 : memref<1x!tpu.dma_semaphore, #tpu.memory_space<semaphore_mem>> -> memref<!tpu.dma_semaphore, #tpu.memory_space<semaphore_mem>>
    tpu.wait_dma2 semaphore(%88 : memref<!tpu.dma_semaphore, #tpu.memory_space<semaphore_mem>>) src(%85 : memref<1x32xf32, #tpu.memory_space<any>>) dst(%86 : memref<1x32xf32, #tpu.memory_space<vmem>>)
    %c4_i32_67 = arith.constant 4 : i32
    %c0_i32_68 = arith.constant 0 : i32
    %c0_i32_69 = arith.constant 0 : i32
    %89 = tpu.memref_slice %arg4[%c0_i32_68, %c0_i32_69] : memref<64x32xf32, #tpu.memory_space<any>> -> memref<1x32xf32, #tpu.memory_space<any>>
    %c4_i32_70 = arith.constant 4 : i32
    %c0_i32_71 = arith.constant 0 : i32
    %90 = tpu.memref_slice %arg5[%c4_i32_70, %c0_i32_71] : memref<8x32xf32, #tpu.memory_space<vmem>> -> memref<1x32xf32, #tpu.memory_space<vmem>>
    %91 = tpu.memref_slice %arg6[%c4_i32_67] : memref<16x!tpu.dma_semaphore, #tpu.memory_space<semaphore_mem>> -> memref<1x!tpu.dma_semaphore, #tpu.memory_space<semaphore_mem>>
    %92 = tpu.memref_squeeze %91 : memref<1x!tpu.dma_semaphore, #tpu.memory_space<semaphore_mem>> -> memref<!tpu.dma_semaphore, #tpu.memory_space<semaphore_mem>>
    tpu.wait_dma2 semaphore(%92 : memref<!tpu.dma_semaphore, #tpu.memory_space<semaphore_mem>>) src(%89 : memref<1x32xf32, #tpu.memory_space<any>>) dst(%90 : memref<1x32xf32, #tpu.memory_space<vmem>>)
    %c5_i32_72 = arith.constant 5 : i32
    %c0_i32_73 = arith.constant 0 : i32
    %c0_i32_74 = arith.constant 0 : i32
    %93 = tpu.memref_slice %arg4[%c0_i32_73, %c0_i32_74] : memref<64x32xf32, #tpu.memory_space<any>> -> memref<1x32xf32, #tpu.memory_space<any>>
    %c5_i32_75 = arith.constant 5 : i32
    %c0_i32_76 = arith.constant 0 : i32
    %94 = tpu.memref_slice %arg5[%c5_i32_75, %c0_i32_76] : memref<8x32xf32, #tpu.memory_space<vmem>> -> memref<1x32xf32, #tpu.memory_space<vmem>>
    %95 = tpu.memref_slice %arg6[%c5_i32_72] : memref<16x!tpu.dma_semaphore, #tpu.memory_space<semaphore_mem>> -> memref<1x!tpu.dma_semaphore, #tpu.memory_space<semaphore_mem>>
    %96 = tpu.memref_squeeze %95 : memref<1x!tpu.dma_semaphore, #tpu.memory_space<semaphore_mem>> -> memref<!tpu.dma_semaphore, #tpu.memory_space<semaphore_mem>>
    tpu.wait_dma2 semaphore(%96 : memref<!tpu.dma_semaphore, #tpu.memory_space<semaphore_mem>>) src(%93 : memref<1x32xf32, #tpu.memory_space<any>>) dst(%94 : memref<1x32xf32, #tpu.memory_space<vmem>>)
    %c6_i32_77 = arith.constant 6 : i32
    %c0_i32_78 = arith.constant 0 : i32
    %c0_i32_79 = arith.constant 0 : i32
    %97 = tpu.memref_slice %arg4[%c0_i32_78, %c0_i32_79] : memref<64x32xf32, #tpu.memory_space<any>> -> memref<1x32xf32, #tpu.memory_space<any>>
    %c6_i32_80 = arith.constant 6 : i32
    %c0_i32_81 = arith.constant 0 : i32
    %98 = tpu.memref_slice %arg5[%c6_i32_80, %c0_i32_81] : memref<8x32xf32, #tpu.memory_space<vmem>> -> memref<1x32xf32, #tpu.memory_space<vmem>>
    %99 = tpu.memref_slice %arg6[%c6_i32_77] : memref<16x!tpu.dma_semaphore, #tpu.memory_space<semaphore_mem>> -> memref<1x!tpu.dma_semaphore, #tpu.memory_space<semaphore_mem>>
    %100 = tpu.memref_squeeze %99 : memref<1x!tpu.dma_semaphore, #tpu.memory_space<semaphore_mem>> -> memref<!tpu.dma_semaphore, #tpu.memory_space<semaphore_mem>>
    tpu.wait_dma2 semaphore(%100 : memref<!tpu.dma_semaphore, #tpu.memory_space<semaphore_mem>>) src(%97 : memref<1x32xf32, #tpu.memory_space<any>>) dst(%98 : memref<1x32xf32, #tpu.memory_space<vmem>>)
    %c7_i32_82 = arith.constant 7 : i32
    %c0_i32_83 = arith.constant 0 : i32
    %c0_i32_84 = arith.constant 0 : i32
    %101 = tpu.memref_slice %arg4[%c0_i32_83, %c0_i32_84] : memref<64x32xf32, #tpu.memory_space<any>> -> memref<1x32xf32, #tpu.memory_space<any>>
    %c7_i32_85 = arith.constant 7 : i32
    %c0_i32_86 = arith.constant 0 : i32
    %102 = tpu.memref_slice %arg5[%c7_i32_85, %c0_i32_86] : memref<8x32xf32, #tpu.memory_space<vmem>> -> memref<1x32xf32, #tpu.memory_space<vmem>>
    %103 = tpu.memref_slice %arg6[%c7_i32_82] : memref<16x!tpu.dma_semaphore, #tpu.memory_space<semaphore_mem>> -> memref<1x!tpu.dma_semaphore, #tpu.memory_space<semaphore_mem>>
    %104 = tpu.memref_squeeze %103 : memref<1x!tpu.dma_semaphore, #tpu.memory_space<semaphore_mem>> -> memref<!tpu.dma_semaphore, #tpu.memory_space<semaphore_mem>>
    tpu.wait_dma2 semaphore(%104 : memref<!tpu.dma_semaphore, #tpu.memory_space<semaphore_mem>>) src(%101 : memref<1x32xf32, #tpu.memory_space<any>>) dst(%102 : memref<1x32xf32, #tpu.memory_space<vmem>>)
    %c0 = arith.constant 0 : index
    %c0_87 = arith.constant 0 : index
    %105 = vector.load %arg2[%c0, %c0_87] : memref<8x1xi32, #tpu.memory_space<vmem>>, vector<8x1xi32>
    %c1 = arith.constant 1 : index
    %c0_88 = arith.constant 0 : index
    %106 = vector.load %arg3[%c1, %c0_88] : memref<2x32xf32, #tpu.memory_space<vmem>>, vector<1x32xf32>
    %107 = vector.shape_cast %106 : vector<1x32xf32> to vector<32xf32>
    %108 = vector.shape_cast %107 : vector<32xf32> to vector<1x32xf32>
    %c0_i32_89 = arith.constant 0 : i32
    %109 = vector.broadcast %c0_i32_89 : i32 to vector<8x1xi32>
    %110 = arith.cmpi eq, %105, %109 : vector<8x1xi32>
    %c0_90 = arith.constant 0 : index
    %c0_91 = arith.constant 0 : index
    %111 = vector.load %arg3[%c0_90, %c0_91] : memref<2x32xf32, #tpu.memory_space<vmem>>, vector<1x32xf32>
    %112 = vector.shape_cast %111 : vector<1x32xf32> to vector<32xf32>
    %113 = vector.shape_cast %112 : vector<32xf32> to vector<1x32xf32>
    %114 = vector.shape_cast %110 : vector<8x1xi1> to vector<8x1xi1>
    %115 = vector.broadcast %114 : vector<8x1xi1> to vector<8x32xi1>
    %116 = vector.shape_cast %113 : vector<1x32xf32> to vector<1x32xf32>
    %117 = vector.broadcast %116 : vector<1x32xf32> to vector<8x32xf32>
    %118 = vector.shape_cast %108 : vector<1x32xf32> to vector<1x32xf32>
    %119 = vector.broadcast %118 : vector<1x32xf32> to vector<8x32xf32>
    %120 = arith.select %115, %117, %119 : vector<8x32xi1>, vector<8x32xf32>
    %c0_92 = arith.constant 0 : index
    %c0_93 = arith.constant 0 : index
    %121 = vector.load %arg5[%c0_92, %c0_93] : memref<8x32xf32, #tpu.memory_space<vmem>>, vector<8x32xf32>
    %122 = arith.addf %121, %120 : vector<8x32xf32>
    %c0_94 = arith.constant 0 : index
    %c0_95 = arith.constant 0 : index
    %123 = vector.load %arg5[%c0_94, %c0_95] : memref<8x32xf32, #tpu.memory_space<vmem>>, vector<8x32xf32>
    tpu.vector_store %arg5[%c0_94, %c0_95], %122 {strides = array<i32>} : memref<8x32xf32, #tpu.memory_space<vmem>>, vector<8x32xf32>,
    return
  }
  func.func @transform_0(%arg0: i32, %arg1: memref<16xi32, #tpu.memory_space<smem>>) -> (i32, i32) {
    %c0_i32 = arith.constant 0 : i32
    %c0_i32_0 = arith.constant 0 : i32
    return %arg0, %c0_i32 : i32, i32
  }
  func.func @transform_1(%arg0: i32, %arg1: memref<16xi32, #tpu.memory_space<smem>>) -> (i32, i32) {
    %c0_i32 = arith.constant 0 : i32
    %c0_i32_0 = arith.constant 0 : i32
    %c0_i32_1 = arith.constant 0 : i32
    return %c0_i32, %c0_i32_0 : i32, i32
  }
  func.func @transform_3(%arg0: i32, %arg1: memref<16xi32, #tpu.memory_space<smem>>) -> (i32, i32) {
    %c0_i32 = arith.constant 0 : i32
    %c0_i32_0 = arith.constant 0 : i32
    return %arg0, %c0_i32 : i32, i32
  }
}

</mosaic_0001>

<bundles_post_ra>
// kernel: tpu_custom_call.1
= control target key start
LH: loop header
LB: loop body
LE: loop exit
PB: predicated region body
PF: predicated region fallthrough
CT: control target
= control target key end

     0   :  { %s1315_s0 = inlined_call_operand.vmem [shape: s32[16], index: 0, kind: input, shape index: {}]   ;;  %s1316_s1 = inlined_call_operand.vmem [shape: s32[16,1], index: 1, kind: input, shape index: {}]   ;;  %s1317_s2 = inlined_call_operand.vmem [shape: f32[2,32], index: 2, kind: input, shape index: {}]   ;;  %s1318_s3 = inlined_call_operand.vmem [shape: f32[64,32], index: 3, kind: input, shape index: {}]   ;;  %s1319_s4 = inlined_call_operand.hbm [shape: f32[16,32], index: 4, kind: output, shape index: {}]  }
   0x1   :  { %s9_s17 = sshll.u32 %s1315_s0, 4  ;;  %s10_s17 = int_to_ptr.vmem [resolvable:$true] %s9_s17 }
   0x2   :  { %s1044_s18 = scalar_lea.vmem %s10_s17, 16  ;;  %p1049_p1 = scmp.lt.s32.totalorder %s10_s17, %s10_s17 }
   0x3   :  { %p1045_p0 = scmp.ne.s32.totalorder %s10_s17, %s1044_s18  ;;  %p1050_p2 = scmp.lt.s32.totalorder %s1044_s18, %s1044_s18 }
   0x5   :  { %p1051_p3 = por %p1050_p2, %p1049_p1 }
   0x7   :  { %p1052_p4 = pnand %p1051_p3, %p1045_p0 }
   0x9   :  { %1055 = shalt.err (!%p1052_p4)  }
   0xa   :  { %s1136_s19 = smov [#allocation4]  }
   0xb   :  { %12 = dma.vmem_to_smem %s10_s17, 16, %s1136_s19, [#allocation3] }
   0xc   :  { %1098 = dma.done.wait [#allocation3], 16 }
   0xd   :  { %1099 = vsyncadd [#allocation3], 4294967280 }
   0xe   :  { %14 = sfence }
   0xf   :  { %15 = vsyncpa [#allocation6], 0 }
  0x10   :  { %17 = vsyncpa [#allocation6 + $0x1], 0  ;;  %s1167_s20 = smov 0   ;;  %s1169_s21 = smov 0  }
  0x11   :  { %s1171_s0 = smov 0   ;;  %s1173_s22 = smov 0  }
  0x12 LB: > { %s1188_s23 = sadd.s32 4294967295, %s1134_s22   ;;  %s903_s24 = sadd.s32 4294967294, %s1134_s22   ;;  %s1134_s22 = sphi %s1173_s22, %s1325_s22   ;;  %s1130_s0 = sphi %s1171_s0, %s1324_s0   ;;  %s1126_s21 = sphi %s1169_s21, %s1323_s21   ;;  %s1122_s20 = sphi %s1167_s20, %s1322_s20  }
  0x13   : > { %s1192_s25 = sadd.s32 1, %s1134_s22   ;;  %s77_s26 = sadd.s32 1, %s1130_s0 }
  0x14   : > { %s74_s27 = ssub.s32 %s1134_s22, %s1192_s25  ;;  %p87_p5 = scmp.ne.s32.totalorder %s1130_s0, %s1126_s21 }
  0x15   : > { %p75_p6 = scmp.eq.s32.totalorder %s74_s27, 0  ;;  %p88_p7 = scmp.eq.s32.totalorder %s1188_s23, 1 }
  0x16   : > { %p93_p8 = scmp.ne.s32.totalorder %s1126_s21, %s1122_s20  ;;  %p94_p9 = scmp.eq.s32.totalorder %s903_s24, 1 }
  0x17   : > { %s1203_s28 = scalar_select %p75_p6, %s1130_s0, %s77_s26  }
  0x18   : > { %p1205_p10 = por %p88_p7, %p87_p5  ;;  %p1209_p11 = por %p94_p9, %p93_p8 }
  0x19   : > { %p906_p12 = scmp.ge.s32.totalorder %s1134_s22, 1  ;;  %p122_p13 = scmp.lt.s32.totalorder %s1134_s22, 3 }
  0x1b   : > { %p123_p0 = pnand %p906_p12, %p122_p13 }
  0x1c   : > { %p143_p1 = scmp.lt.s32.totalorder (!%p123_p0), %s1188_s23, 1  ;;  %s1217_s5 = sshll.u32 (!%p123_p0), %s1188_s23, 3 }
  0x1d   : > { %126 = sbr.rel (%p123_p0) target bundleno = 300 (0x12c), region = 28  ;;  %s148_s6 = sld [smem:[#allocation4 + %s1217_s5]] (!%p123_p0) }
  0x1e   : > { %s140_s9 = sand.u32 (!%p123_p0), 1, %s1126_s21  }
  0x1f   : > { %s907_s13 = sshll.u32 (!%p123_p0), %s140_s9, 3 }
  0x20   : > { %s1232_s17 = scalar_lea.vmem (!%p123_p0), [#allocation5], %s907_s13 }
  0x22   : > { %s144_s7 = scalar_select %p143_p1, %s1188_s23, 1 }
  0x23   : > { %p149_p2 = scmp.gt.s32.totalorder %s148_s6, 0  ;;  %p910_p3 = scmp.lt.s32.totalorder %s148_s6, 63 }
  0x24   : > { %s908_s8 = sshll.u32 %s144_s7, 3 }
  0x25   : > { %s1225_s12 = scalar_lea.vmem %s1316_s1, %s908_s8  ;;  %s1327_s6 = smov (!%p149_p2, %s148_s6), 0 }
  0x26   : > { %s1329_s6 = smov (!%p910_p3, %s1327_s6), 63 }
  0x27   : > { %s153_s16 = scalar_lea.vmem %s1318_s3, %s1329_s6 }
  0x28   : > { %v172_v0 = vld [vmem:[%s153_s16] sm:$0x1] }
  0x29   : > { %173 = vst [vmem:[%s1232_s17] sm:$0x1] %v172_v0 }
  0x2a   : > { %199 = vsyncadd [#allocation2], 16  ;;  %s200_s18 = sadd.s32 1, %s1217_s5 }
  0x2b   : > { %s201_s19 = sld [smem:[#allocation4 + %s200_s18]] }
  0x31   : > { %p202_p4 = scmp.gt.s32.totalorder %s201_s19, 0  ;;  %p915_p5 = scmp.lt.s32.totalorder %s201_s19, 63 }
  0x33   : > { %s1331_s19 = smov (!%p202_p4, %s201_s19), 0 }
  0x34   : > { %s1333_s19 = smov (!%p915_p5, %s1331_s19), 63 }
  0x35   : > { %s206_s27 = scalar_lea.vmem %s1318_s3, %s1333_s19 }
  0x36   : > { %v227_v1 = vld [vmem:[%s206_s27] sm:$0x1] }
  0x37   : > { %921 = vst [vmem:[%s1232_s17 + $0x1] sm:$0x1] %v227_v1 }
  0x38   : > { %254 = vsyncadd [#allocation2 + $0x1], 16  ;;  %s255_s6 = sadd.s32 2, %s1217_s5 }
  0x39   : > { %s256_s7 = sld [smem:[#allocation4 + %s255_s6]] }
  0x3f   : > { %p257_p6 = scmp.gt.s32.totalorder %s256_s7, 0  ;;  %p922_p7 = scmp.lt.s32.totalorder %s256_s7, 63 }
  0x41   : > { %s1335_s7 = smov (!%p257_p6, %s256_s7), 0 }
  0x42   : > { %s1337_s7 = smov (!%p922_p7, %s1335_s7), 63 }
  0x43   : > { %s261_s11 = scalar_lea.vmem %s1318_s3, %s1337_s7 }
  0x44   : > { %v282_v2 = vld [vmem:[%s261_s11] sm:$0x1] }
  0x45   : > { %928 = vst [vmem:[%s1232_s17 + $0x2] sm:$0x1] %v282_v2 }
  0x46   : > { %309 = vsyncadd [#allocation2 + $0x2], 16  ;;  %s310_s13 = sadd.s32 3, %s1217_s5 }
  0x47   : > { %s311_s14 = sld [smem:[#allocation4 + %s310_s13]] }
  0x4d   : > { %p312_p8 = scmp.gt.s32.totalorder %s311_s14, 0  ;;  %p929_p9 = scmp.lt.s32.totalorder %s311_s14, 63 }
  0x4f   : > { %s1339_s14 = smov (!%p312_p8, %s311_s14), 0 }
  0x50   : > { %s1341_s14 = smov (!%p929_p9, %s1339_s14), 63 }
  0x51   : > { %s316_s18 = scalar_lea.vmem %s1318_s3, %s1341_s14 }
  0x52   : > { %v337_v3 = vld [vmem:[%s316_s18] sm:$0x1] }
  0x53   : > { %935 = vst [vmem:[%s1232_s17 + $0x3] sm:$0x1] %v337_v3 }
  0x54   : > { %364 = vsyncadd [#allocation2 + $0x3], 16  ;;  %s365_s19 = sadd.s32 4, %s1217_s5 }
  0x55   : > { %s366_s24 = sld [smem:[#allocation4 + %s365_s19]] }
  0x5b   : > { %p367_p12 = scmp.gt.s32.totalorder %s366_s24, 0  ;;  %p936_p13 = scmp.lt.s32.totalorder %s366_s24, 63 }
  0x5d   : > { %s1343_s24 = smov (!%p367_p12, %s366_s24), 0 }
  0x5e   : > { %s1345_s24 = smov (!%p936_p13, %s1343_s24), 63 }
  0x5f   : > { %s371_s6 = scalar_lea.vmem %s1318_s3, %s1345_s24 }
  0x60   : > { %v392_v4 = vld [vmem:[%s371_s6] sm:$0x1] }
  0x61   : > { %942 = vst [vmem:[%s1232_s17 + $0x4] sm:$0x1] %v392_v4 }
  0x62   : > { %419 = vsyncadd [#allocation2 + $0x4], 16  ;;  %s420_s7 = sadd.s32 5, %s1217_s5 }
  0x63   : > { %s421_s8 = sld [smem:[#allocation4 + %s420_s7]] }
  0x69   : > { %p422_p0 = scmp.gt.s32.totalorder %s421_s8, 0  ;;  %p943_p1 = scmp.lt.s32.totalorder %s421_s8, 63 }
  0x6b   : > { %s1347_s8 = smov (!%p422_p0, %s421_s8), 0 }
  0x6c   : > { %s1349_s8 = smov (!%p943_p1, %s1347_s8), 63 }
  0x6d   : > { %s426_s13 = scalar_lea.vmem %s1318_s3, %s1349_s8 }
  0x6e   : > { %v447_v5 = vld [vmem:[%s426_s13] sm:$0x1] }
  0x6f   : > { %949 = vst [vmem:[%s1232_s17 + $0x5] sm:$0x1] %v447_v5 }
  0x70   : > { %474 = vsyncadd [#allocation2 + $0x5], 16  ;;  %s475_s14 = sadd.s32 6, %s1217_s5 }
  0x71   : > { %s476_s15 = sld [smem:[#allocation4 + %s475_s14]] }
  0x77   : > { %p477_p2 = scmp.gt.s32.totalorder %s476_s15, 0  ;;  %p950_p3 = scmp.lt.s32.totalorder %s476_s15, 63 }
  0x79   : > { %s1351_s15 = smov (!%p477_p2, %s476_s15), 0 }
  0x7a   : > { %s1353_s15 = smov (!%p950_p3, %s1351_s15), 63 }
  0x7b   : > { %s481_s19 = scalar_lea.vmem %s1318_s3, %s1353_s15 }
  0x7c   : > { %v502_v6 = vld [vmem:[%s481_s19] sm:$0x1] }
  0x7d   : > { %956 = vst [vmem:[%s1232_s17 + $0x6] sm:$0x1] %v502_v6 }
  0x7e   : > { %529 = vsyncadd [#allocation2 + $0x6], 16  ;;  %s530_s24 = sadd.s32 7, %s1217_s5 }
  0x7f   : > { %s531_s26 = sld [smem:[#allocation4 + %s530_s24]] }
  0x85   : > { %p532_p4 = scmp.gt.s32.totalorder %s531_s26, 0  ;;  %p957_p5 = scmp.lt.s32.totalorder %s531_s26, 63 }
  0x87   : > { %s1355_s26 = smov (!%p532_p4, %s531_s26), 0 }
  0x88   : > { %s1357_s26 = smov (!%p957_p5, %s1355_s26), 63 }
  0x89   : > { %s536_s7 = scalar_lea.vmem %s1318_s3, %s1357_s26 }
  0x8a   : > { %v557_v7 = vld [vmem:[%s536_s7] sm:$0x1] }
  0x8b   : > { %963 = vst [vmem:[%s1232_s17 + $0x7] sm:$0x1] %v557_v7 }
  0x8c   : > { %584 = vsyncadd [#allocation2 + $0x7], 16 }
  0x8d   : > { %1100 = dma.done.wait [#allocation2], 16 }
  0x8e   : > { %1101 = vsyncadd [#allocation2], 4294967280 }
  0x8f   : > { %1102 = dma.done.wait [#allocation2 + $0x1], 16 }
  0x90   : > { %1103 = vsyncadd [#allocation2 + $0x1], 4294967280 }
  0x91   : > { %1104 = dma.done.wait [#allocation2 + $0x2], 16 }
  0x92   : > { %1105 = vsyncadd [#allocation2 + $0x2], 4294967280 }
  0x93   : > { %1106 = dma.done.wait [#allocation2 + $0x3], 16 }
  0x94   : > { %1107 = vsyncadd [#allocation2 + $0x3], 4294967280 }
  0x95   : > { %1108 = dma.done.wait [#allocation2 + $0x4], 16 }
  0x96   : > { %1109 = vsyncadd [#allocation2 + $0x4], 4294967280 }
  0x97   : > { %1110 = dma.done.wait [#allocation2 + $0x5], 16 }
  0x98   : > { %1111 = vsyncadd [#allocation2 + $0x5], 4294967280 }
  0x99   : > { %1112 = dma.done.wait [#allocation2 + $0x6], 16 }
  0x9a   : > { %1113 = vsyncadd [#allocation2 + $0x6], 4294967280 }
  0x9b   : > { %1114 = dma.done.wait [#allocation2 + $0x7], 16 }
  0x9c   : > { %1115 = vsyncadd [#allocation2 + $0x7], 4294967280  ;;  %v1137_v8 = vmov 0   ;;  %v602_v9 = vld [vmem:[%s1225_s12] sm:$0xff]  ;;  %s967_s13 = sshll.u32 %s1188_s23, 7  ;;  %s638_s14 = sshll.u32 %s1232_s17, 4  ;;  %s639_s14 = int_to_ptr.vmem [resolvable:$true] %s638_s14 }
  0x9d   : > { %1043 = vset.pattern.permute.xlu0 %v1137_v8  ;;  %vm604_vm0 = vcmp.eq.s32.totalorder %v602_v9, 0  ;;  %v965_v11 = vld [vmem:[%s1317_s2 + $0x1] ss:$0 sm:$0xff]  ;;  %v964_v12 = vld [vmem:[%s1317_s2] ss:$0 sm:$0xff]  ;;  %vm622_vm2 = vcmask 261120   ;;  %s636_s16 = scalar_lea.hbm %s1319_s4, %s967_s13 }
  0x9e   : > { %v606_v10 = vsel %vm604_vm0, 1, %v1137_v8  ;;  %v620_v13 = vld [vmem:[%s1232_s17] sm:$0xff]  ;;  %s625_s18 = scalar_lea.sflag [#allocation6], %s140_s9  ;;  %s1056_s19 = scalar_lea.vmem %s639_s14, 128 }
  0x9f   : > { %608 = vperm.xlu0 %1043, %v606_v10   ;;  %p1057_p6 = scmp.ne.s32.totalorder %s639_s14, %s1056_s19  ;;  %s1138_s24 = smov [#allocation5]  }
  0xa0   : > { %s1060_s23 = sshll.u32 %s1138_s24, 4  ;;  %s1061_s23 = int_to_ptr.vmem [resolvable:$false] %s1060_s23 }
  0xa1   : > { %p1058_p7 = pnand %p1057_p6, %p1205_p10  ;;  %s1062_s26 = scalar_lea.vmem %s1061_s23, 256 }
  0xa2   : > { %p1063_p9 = scmp.lt.s32.totalorder %s639_s14, %s1061_s23  ;;  %p1064_p12 = scmp.lt.s32.totalorder %s1062_s26, %s1056_s19 }
  0xa3   : > { %p1059_p8 = pneg %p1058_p7 }
  0xa4   : > { %p1065_p13 = por %p1064_p12, %p1063_p9 }
  0xa6   : > { %p1066_p0 = pnand %p1065_p13, %p1059_p8 }
 0x11a   : > { %v609_v14 = vpop.permute.xlu0 %608 }
 0x11b   : > { %vm610_vm1 = vcmp.eq.s32.totalorder %v609_v14, 1 }
 0x11c   : > { %v619_v15 = vsel %vm610_vm1, %v964_v12, %v965_v11 }
 0x11d   : > { %v621_v16 = vadd.f32 %v620_v13, %v619_v15 }
 0x11f   : > { %623 = vst.msk [vmem:[%s1232_s17] sm:$0xff] %vm622_vm2, %v621_v16 }
 0x120   : > { %1069 = shalt.err (!%p1066_p0)
}
 0x121   : > { %s1070_s27 = scalar_lea.hbm %s636_s16, 128  ;;  %s1074_s6 = scalar_lea.hbm %s1319_s4, 256 }
 0x122   : > { %p1071_p1 = scmp.ne.s32.totalorder %s636_s16, %s1070_s27  ;;  %p1075_p4 = scmp.lt.s32.totalorder %s636_s16, %s1319_s4 }
 0x123   : > { %p1076_p5 = scmp.lt.s32.totalorder %s1074_s6, %s1070_s27 }
 0x124   : > { %p1072_p2 = pnand %p1071_p1, %p1205_p10 }
 0x125   : > { %p1077_p6 = por %p1076_p5, %p1075_p4 }
 0x126   : > { %p1073_p3 = pneg %p1072_p2 }
 0x128   : > { %p1078_p7 = pnand %p1077_p6, %p1073_p3 }
 0x12a   : > { %1081 = shalt.err (!%p1078_p7)
}
 0x12b   : > { %1002 = dma.vmem_to_hbm [thread:$0]  (%p1205_p10), %s639_s14, 128, %s636_s16, %s625_s18  }
 0x12c PF: > { %p1008_p8 = scmp.ge.s32.totalorder %s1134_s22, 2  ;;  %s650_s8 = sand.u32 1, %s1122_s20  }
 0x12d   : > { %s651_s10 = scalar_lea.sflag [#allocation6], %s650_s8 }
 0x12e   : > { %p1005_p9 = pnand %p1008_p8, %p1209_p11 }
 0x130   : > { %p1006_p12 = pneg %p1005_p9 }
 0x132   : > { %1117 = dma.done.wait (%p1006_p12), %s651_s10, 128  }
 0x133   : > { %1119 = vsyncadd (%p1006_p12), %s651_s10, 4294967168  ;;  %p20_p13 = scmp.ge.s32.totalorder %s1192_s25, 4   ;;  %s1322_s20 = smov %s1126_s21 }
 0x134   : > { %s1323_s21 = smov %s1130_s0  ;;  %s1324_s0 = smov %s1203_s28 }
 0x135   : > { %s1325_s22 = smov %s1192_s25  ;;  %22 = sbr.rel (!%p20_p13) target bundleno = 18 (0x12), region = 420 }
 0x13a   :  { %656 = vsyncpa [#allocation6], 1 }
 0x13b   :  { %658 = vsyncpa [#allocation6 + $0x1], 1 }
 0x13c   :  { %659 = vsyncmov [#allocation2] }
 0x13f   :  { %s660_s22 = vpop.sfrf %659 }
 0x140   :  { %p970_p10 = scmp.ne.s32.totalorder %s660_s22, 0 }
 0x142   :  { %664 = shalt.err (%p970_p10)  }
 0x143   :  { %666 = vsyncmov [#allocation2 + $0x1] }
 0x146   :  { %s667_s29 = vpop.sfrf %666 }
 0x147   :  { %p971_p11 = scmp.ne.s32.totalorder %s667_s29, 0 }
 0x149   :  { %671 = shalt.err (%p971_p11)  }
 0x14a   :  { %673 = vsyncmov [#allocation2 + $0x2] }
 0x14d   :  { %s674_s30 = vpop.sfrf %673 }
 0x14e   :  { %p972_p0 = scmp.ne.s32.totalorder %s674_s30, 0 }
 0x150   :  { %678 = shalt.err (%p972_p0)  }
 0x151   :  { %680 = vsyncmov [#allocation2 + $0x3] }
 0x154   :  { %s681_s11 = vpop.sfrf %680 }
 0x155   :  { %p973_p1 = scmp.ne.s32.totalorder %s681_s11, 0 }
 0x157   :  { %685 = shalt.err (%p973_p1)  }
 0x158   :  { %687 = vsyncmov [#allocation2 + $0x4] }
 0x15b   :  { %s688_s25 = vpop.sfrf %687 }
 0x15c   :  { %p974_p2 = scmp.ne.s32.totalorder %s688_s25, 0 }
 0x15e   :  { %692 = shalt.err (%p974_p2)  }
 0x15f   :  { %694 = vsyncmov [#allocation2 + $0x5] }
 0x162   :  { %s695_s1 = vpop.sfrf %694 }
 0x163   :  { %p975_p3 = scmp.ne.s32.totalorder %s695_s1, 0 }
 0x165   :  { %699 = shalt.err (%p975_p3)  }
 0x166   :  { %701 = vsyncmov [#allocation2 + $0x6] }
 0x169   :  { %s702_s2 = vpop.sfrf %701 }
 0x16a   :  { %p976_p4 = scmp.ne.s32.totalorder %s702_s2, 0 }
 0x16c   :  { %706 = shalt.err (%p976_p4)  }
 0x16d   :  { %708 = vsyncmov [#allocation2 + $0x7] }
 0x170   :  { %s709_s3 = vpop.sfrf %708 }
 0x171   :  { %p977_p5 = scmp.ne.s32.totalorder %s709_s3, 0 }
 0x173   :  { %713 = shalt.err (%p977_p5)  }
 0x174   :  { %715 = vsyncmov [#allocation2 + $0x8] }
 0x177   :  { %s716_s4 = vpop.sfrf %715 }
 0x178   :  { %p978_p6 = scmp.ne.s32.totalorder %s716_s4, 0 }
 0x17a   :  { %720 = shalt.err (%p978_p6)  }
 0x17b   :  { %722 = vsyncmov [#allocation2 + $0x9] }
 0x17e   :  { %s723_s20 = vpop.sfrf %722 }
 0x17f   :  { %p979_p7 = scmp.ne.s32.totalorder %s723_s20, 0 }
 0x181   :  { %727 = shalt.err (%p979_p7)  }
 0x182   :  { %729 = vsyncmov [#allocation2 + $0xa] }
 0x185   :  { %s730_s21 = vpop.sfrf %729 }
 0x186   :  { %p980_p8 = scmp.ne.s32.totalorder %s730_s21, 0 }
 0x188   :  { %734 = shalt.err (%p980_p8)  }
 0x189   :  { %736 = vsyncmov [#allocation2 + $0xb] }
 0x18c   :  { %s737_s0 = vpop.sfrf %736 }
 0x18d   :  { %p981_p9 = scmp.ne.s32.totalorder %s737_s0, 0 }
 0x18f   :  { %741 = shalt.err (%p981_p9)  }
 0x190   :  { %743 = vsyncmov [#allocation2 + $0xc] }
 0x193   :  { %s744_s28 = vpop.sfrf %743 }
 0x194   :  { %p982_p12 = scmp.ne.s32.totalorder %s744_s28, 0 }
 0x196   :  { %748 = shalt.err (%p982_p12)  }
 0x197   :  { %750 = vsyncmov [#allocation2 + $0xd] }
 0x19a   :  { %s751_s13 = vpop.sfrf %750 }
 0x19b   :  { %p983_p13 = scmp.ne.s32.totalorder %s751_s13, 0 }
 0x19d   :  { %755 = shalt.err (%p983_p13)  }
 0x19e   :  { %757 = vsyncmov [#allocation2 + $0xe] }
 0x1a1   :  { %s758_s14 = vpop.sfrf %757 }
 0x1a2   :  { %p984_p10 = scmp.ne.s32.totalorder %s758_s14, 0 }
 0x1a4   :  { %762 = shalt.err (%p984_p10)  }
 0x1a5   :  { %764 = vsyncmov [#allocation2 + $0xf] }
 0x1a8   :  { %s765_s12 = vpop.sfrf %764 }
 0x1a9   :  { %p985_p11 = scmp.ne.s32.totalorder %s765_s12, 0 }
 0x1ab   :  { %769 = shalt.err (%p985_p11)  }

</bundles_post_ra>
